<compile_context>
chip_gen: v6e
topology: v6e:2x2x1
jax: 0.10.0
libtpu: 0.0.40
codegen_flags: <defaults>
</compile_context>

<pallas_src>
import functools

import jax
import jax.numpy as jnp
from jax.experimental import pallas as pl
from jax.experimental.pallas import tpu as pltpu


def _focal_loss_kernel(score_ref, target_ref, sum_ref, cnt_ref, *,
                       ignore_label, hw, tile_p, needs_tail_mask):
    """One pixel tile of one batch row -> (sum of masked NLL, valid count).

    score_ref:  (C, TP) float - logits tile, channels on sublanes
    target_ref: (1, TP) int   - labels tile (ignore_label marks masked pixels)
    sum_ref:    (1, 1)  f32   - this tile's sum of -log p_target over valid px
    cnt_ref:    (1, 1)  f32   - this tile's number of valid pixels
    """
    x = score_ref[...].astype(jnp.float32)            # (C, TP)
    t = target_ref[...].astype(jnp.int32)             # (1, TP)

    # numerically-stable log-softmax denominator per pixel (channel reduce)
    m = jnp.max(x, axis=0, keepdims=True)             # (1, TP)
    lse = jnp.log(jnp.sum(jnp.exp(x - m), axis=0, keepdims=True)) + m

    # target-class logit via channel-iota compare (no gather needed)
    ch = jax.lax.broadcasted_iota(jnp.int32, x.shape, 0)
    x_t = jnp.sum(jnp.where(ch == t, x, 0.0), axis=0, keepdims=True)  # (1, TP)

    valid = t != ignore_label
    if needs_tail_mask:
        # Only relevant when H*W is not a multiple of tile_p (padded edge block);
        # statically compiled out otherwise (saves iota+compare+and per element).
        lane = jax.lax.broadcasted_iota(jnp.int32, t.shape, 1)
        valid = jnp.logical_and(valid, pl.program_id(1) * tile_p + lane < hw)

    # True select: lse may be NaN/Inf in out-of-bounds lanes of the padded edge
    # block; a multiply-by-mask would leak those NaNs into the sum.
    nll = jnp.where(valid, lse - x_t, 0.0)             # per-pixel -log p_t
    sum_ref[...] = jnp.sum(nll, keepdims=True)
    cnt_ref[...] = jnp.sum(valid.astype(jnp.float32), keepdims=True)


def _vmem_capacity_bytes():
    """Per-core VMEM capacity; conservative 64 MiB (v7x) fallback."""
    try:
        cap = getattr(pltpu.get_tpu_info(), "vmem_capacity_bytes", None)
        if cap:
            return int(cap)
    except Exception:
        pass
    return 64 * 1024 * 1024


def focal_loss(score, target, *, gamma=2, balance_param=0.25, ignore_label=-1,
               tile_p=None):
    """score: (N, C, H, W) float; target: (N, H, W) int. Returns scalar f32 loss."""
    del balance_param  # mirrors the PyTorch module: defined but unused in forward
    n, c, h, w = score.shape
    th, tw = target.shape[1], target.shape[2]
    if (h, w) != (th, tw):
        # Keep the resized logits in the input dtype (no f32 blow-up in HBM).
        # TODO(synk): fuse bilinear upsampling into the kernel (interpolate
        # low-res logit tiles on the VPU) to avoid materializing the S^2-larger
        # array; also note jax.image.resize uses half-pixel sampling which can
        # differ slightly from F.upsample(mode='bilinear', align_corners=True).
        score = jax.image.resize(
            score, (n, c, th, tw), method="bilinear").astype(score.dtype)
        h, w = th, tw

    hw = h * w
    # contiguous reshapes only: no HBM transpose pass, no HBM pad pass
    score3 = score.reshape(n, c, hw)
    # int8/int16 labels pass through untouched (less target HBM traffic);
    # anything else is normalized to int32.  Widening happens inside the kernel.
    if target.dtype not in (jnp.int8, jnp.int16, jnp.int32):
        target = target.astype(jnp.int32)
    target3 = target.reshape(n, 1, hw)

    score_itemsize = jnp.dtype(score3.dtype).itemsize
    tgt_itemsize = jnp.dtype(target3.dtype).itemsize
    bytes_per_pixel = c * score_itemsize + tgt_itemsize
    c_pad = ((c + 7) // 8) * 8                     # sublane padding for f32 temps
    vmem_cap = _vmem_capacity_bytes()

    # --- tile selection: ~2 MiB of pipelined input per grid step -------------
    if tile_p is None:
        tile_p = (2 << 20) // bytes_per_pixel
    tile_p = max(128, min(int(tile_p), 65536))
    tile_p = (tile_p // 128) * 128
    hw_pad = ((hw + 127) // 128) * 128
    tile_p = min(tile_p, hw_pad)

    def _vmem_need(tp):
        pipelined = 2 * tp * bytes_per_pixel       # double-buffered input tiles
        compute = 6 * c_pad * tp * 4               # rough bound on f32 temporaries
        return pipelined + compute + (2 << 20)     # outputs + slack

    while tile_p > 128 and _vmem_need(tile_p) > vmem_cap - (8 << 20):
        tile_p = max(128, ((tile_p // 2) // 128) * 128)

    num_tiles = (hw + tile_p - 1) // tile_p
    needs_tail_mask = (hw % tile_p) != 0
    # Explicit scoped-VMEM limit so big tiles don't trip the 16/32 MiB defaults.
    vmem_limit = int(min(vmem_cap, max(32 << 20, _vmem_need(tile_p) + (8 << 20))))

    kernel = functools.partial(
        _focal_loss_kernel, ignore_label=ignore_label, hw=hw, tile_p=tile_p,
        needs_tail_mask=needs_tail_mask)

    sums, cnts = pl.pallas_call(
        kernel,
        out_shape=(jax.ShapeDtypeStruct((n, num_tiles, 1, 1), jnp.float32),
                   jax.ShapeDtypeStruct((n, num_tiles, 1, 1), jnp.float32)),
        grid_spec=pltpu.PrefetchScalarGridSpec(
            num_scalar_prefetch=0,
            grid=(n, num_tiles),
            in_specs=[
                # TODO(synk): if DMA is still exposed at very small C, consider
                # pipeline_mode=pl.Buffered(3) on the score spec.
                pl.BlockSpec((pl.Squeezed(), c, tile_p), lambda b, i: (b, 0, i)),
                pl.BlockSpec((pl.Squeezed(), 1, tile_p), lambda b, i: (b, 0, i)),
            ],
            out_specs=(
                pl.BlockSpec((pl.Squeezed(), pl.Squeezed(), 1, 1),
                             lambda b, i: (b, i, 0, 0)),
                pl.BlockSpec((pl.Squeezed(), pl.Squeezed(), 1, 1),
                             lambda b, i: (b, i, 0, 0)),
            ),
        ),
        compiler_params=pltpu.CompilerParams(
            dimension_semantics=("parallel", "parallel"),
            vmem_limit_bytes=vmem_limit),
    )(score3, target3)

    # Final mean over non-ignored pixels + focal transform in plain JAX.
    # NaN if every pixel is ignored, matching CrossEntropyLoss(reduction='mean').
    ce = jnp.sum(sums) / jnp.sum(cnts)
    logpt = -ce
    pt = jnp.exp(logpt)
    return -((1.0 - pt) ** gamma) * logpt


def focal_loss_ref(score, target, gamma=2, ignore_label=-1):
    """Pure-JAX reference matching the PyTorch forward."""
    n, c, h, w = score.shape
    logits = jnp.transpose(score, (0, 2, 3, 1)).reshape(-1, c).astype(jnp.float32)
    tgt = target.reshape(-1)
    logp = jax.nn.log_softmax(logits, axis=-1)
    valid = tgt != ignore_label
    tgt_safe = jnp.where(valid, tgt, 0)
    nll = -jnp.take_along_axis(logp, tgt_safe[:, None], axis=-1)[:, 0]
    ce = jnp.sum(jnp.where(valid, nll, 0.0)) / jnp.sum(valid)
    logpt = -ce
    pt = jnp.exp(logpt)
    return -((1.0 - pt) ** gamma) * logpt


if __name__ == "__main__":
    key = jax.random.PRNGKey(0)
    k1, k2, k3, k4 = jax.random.split(key, 4)

    # Test 1: aligned f32 input with ignore labels (H*W multiple of 128).
    N, C, H, W = 2, 4, 16, 16
    score = jax.random.normal(k1, (N, C, H, W), dtype=jnp.float32)
    target = jax.random.randint(k2, (N, H, W), -1, C, dtype=jnp.int32)
    out = jax.block_until_ready(focal_loss(score, target, gamma=2, ignore_label=-1))
    ref = focal_loss_ref(score, target, gamma=2, ignore_label=-1)
    assert jnp.allclose(out, ref, rtol=1e-4, atol=1e-5), (out, ref)

    # Test 2: ragged pixel count + multi-tile grid (exercises the tail mask).
    H2, W2 = 15, 15
    score2 = jax.random.normal(k3, (N, C, H2, W2), dtype=jnp.float32)
    target2 = jax.random.randint(k4, (N, H2, W2), -1, C, dtype=jnp.int32)
    out2 = jax.block_until_ready(focal_loss(score2, target2, tile_p=128))
    ref2 = focal_loss_ref(score2, target2)
    assert jnp.allclose(out2, ref2, rtol=1e-4, atol=1e-5), (out2, ref2)

    # Test 3: bf16 logits pass straight through; f32 cast happens in the kernel.
    out3 = jax.block_until_ready(focal_loss(score.astype(jnp.bfloat16), target))
    ref3 = focal_loss_ref(score.astype(jnp.bfloat16), target)
    assert jnp.allclose(out3, ref3, rtol=5e-3, atol=5e-3), (out3, ref3)

    print("KERNEL_OK")
</pallas_src>

<mosaic_0001>
module attributes {stable_mosaic.version = 11 : i64} {
  func.func @_focal_loss_kernel(%arg0: i32, %arg1: i32, %arg2: memref<1x4x256xf32, #tpu.memory_space<vmem>>, %arg3: memref<1x1x256xi32, #tpu.memory_space<vmem>>, %arg4: memref<1x1x1x1xf32, #tpu.memory_space<vmem>>, %arg5: memref<1x1x1x1xf32, #tpu.memory_space<vmem>>) attributes {dimension_semantics = [#tpu.dimension_semantics<parallel>, #tpu.dimension_semantics<parallel>], iteration_bounds = array<i64: 2, 1>, scalar_prefetch = 0 : i64, scratch_operands = 0 : i64, tpu.core_type = #tpu.core_type<tc>, window_params = [{transform_indices = @transform_0, window_bounds = array<i64: 1, 4, 256>}, {transform_indices = @transform_1, window_bounds = array<i64: 1, 1, 256>}, {transform_indices = @transform_2, window_bounds = array<i64: 1, 1, 1, 1>}, {transform_indices = @transform_3, window_bounds = array<i64: 1, 1, 1, 1>}]} {
    %c0 = arith.constant 0 : index
    %c0_0 = arith.constant 0 : index
    %c0_1 = arith.constant 0 : index
    %0 = vector.load %arg2[%c0, %c0_0, %c0_1] : memref<1x4x256xf32, #tpu.memory_space<vmem>>, vector<1x4x256xf32>
    %1 = vector.shape_cast %0 : vector<1x4x256xf32> to vector<4x256xf32>
    %c0_2 = arith.constant 0 : index
    %c0_3 = arith.constant 0 : index
    %c0_4 = arith.constant 0 : index
    %2 = vector.load %arg3[%c0_2, %c0_3, %c0_4] : memref<1x1x256xi32, #tpu.memory_space<vmem>>, vector<1x1x256xi32>
    %3 = vector.shape_cast %2 : vector<1x1x256xi32> to vector<1x256xi32>
    %cst = arith.constant dense<0xFF800000> : vector<256xf32>
    %4 = vector.multi_reduction <maximumf>, %1, %cst [0] : vector<4x256xf32> to vector<256xf32>
    %5 = vector.shape_cast %4 : vector<256xf32> to vector<1x256xf32>
    %6 = vector.broadcast %5 : vector<1x256xf32> to vector<4x256xf32>
    %7 = arith.subf %1, %6 : vector<4x256xf32>
    %8 = math.exp %7 : vector<4x256xf32>
    %cst_5 = arith.constant dense<0.000000e+00> : vector<256xf32>
    %9 = vector.multi_reduction <add>, %8, %cst_5 [0] : vector<4x256xf32> to vector<256xf32>
    %10 = vector.shape_cast %9 : vector<256xf32> to vector<1x256xf32>
    %11 = math.log %10 : vector<1x256xf32>
    %12 = arith.addf %11, %5 : vector<1x256xf32>
    %13 = tpu.iota {dimensions = array<i32: 0>} : vector<4x256xi32>
    %14 = vector.broadcast %3 : vector<1x256xi32> to vector<4x256xi32>
    %15 = arith.cmpi eq, %13, %14 : vector<4x256xi32>
    %cst_6 = arith.constant 0.000000e+00 : f32
    %16 = vector.broadcast %cst_6 : f32 to vector<4x256xf32>
    %17 = arith.select %15, %1, %16 : vector<4x256xi1>, vector<4x256xf32>
    %cst_7 = arith.constant dense<0.000000e+00> : vector<256xf32>
    %18 = vector.multi_reduction <add>, %17, %cst_7 [0] : vector<4x256xf32> to vector<256xf32>
    %19 = vector.shape_cast %18 : vector<256xf32> to vector<1x256xf32>
    %c-1_i32 = arith.constant -1 : i32
    %20 = vector.broadcast %c-1_i32 : i32 to vector<1x256xi32>
    %21 = arith.cmpi ne, %3, %20 : vector<1x256xi32>
    %22 = arith.subf %12, %19 : vector<1x256xf32>
    %cst_8 = arith.constant 0.000000e+00 : f32
    %23 = vector.broadcast %cst_8 : f32 to vector<1x256xf32>
    %24 = arith.select %21, %22, %23 : vector<1x256xi1>, vector<1x256xf32>
    %25 = vector.shape_cast %24 : vector<1x256xf32> to vector<1x1x256xf32>
    %cst_9 = arith.constant dense<0.000000e+00> : vector<1xf32>
    %26 = vector.multi_reduction <add>, %25, %cst_9 [1, 2] : vector<1x1x256xf32> to vector<1xf32>
    %27 = vector.shape_cast %26 : vector<1xf32> to vector<1x1x1xf32>
    %28 = vector.extract %27[0, 0, 0] : f32 from vector<1x1x1xf32>
    %29 = vector.broadcast %28 : f32 to vector<1x1xf32>
    %c0_10 = arith.constant 0 : index
    %c0_11 = arith.constant 0 : index
    %c0_12 = arith.constant 0 : index
    %c0_13 = arith.constant 0 : index
    %30 = vector.load %arg4[%c0_10, %c0_11, %c0_12, %c0_13] : memref<1x1x1x1xf32, #tpu.memory_space<vmem>>, vector<1x1x1x1xf32>
    %31 = vector.shape_cast %30 : vector<1x1x1x1xf32> to vector<1x1xf32>
    %32 = vector.shape_cast %29 : vector<1x1xf32> to vector<1x1x1x1xf32>
    tpu.vector_store %arg4[%c0_10, %c0_11, %c0_12, %c0_13], %32 {strides = array<i32>} : memref<1x1x1x1xf32, #tpu.memory_space<vmem>>, vector<1x1x1x1xf32>,
    %33 = arith.extui %21 : vector<1x256xi1> to vector<1x256xi32>
    %34 = arith.sitofp %33 : vector<1x256xi32> to vector<1x256xf32>
    %35 = vector.shape_cast %34 : vector<1x256xf32> to vector<1x1x256xf32>
    %cst_14 = arith.constant dense<0.000000e+00> : vector<1xf32>
    %36 = vector.multi_reduction <add>, %35, %cst_14 [1, 2] : vector<1x1x256xf32> to vector<1xf32>
    %37 = vector.shape_cast %36 : vector<1xf32> to vector<1x1x1xf32>
    %38 = vector.extract %37[0, 0, 0] : f32 from vector<1x1x1xf32>
    %39 = vector.broadcast %38 : f32 to vector<1x1xf32>
    %c0_15 = arith.constant 0 : index
    %c0_16 = arith.constant 0 : index
    %c0_17 = arith.constant 0 : index
    %c0_18 = arith.constant 0 : index
    %40 = vector.load %arg5[%c0_15, %c0_16, %c0_17, %c0_18] : memref<1x1x1x1xf32, #tpu.memory_space<vmem>>, vector<1x1x1x1xf32>
    %41 = vector.shape_cast %40 : vector<1x1x1x1xf32> to vector<1x1xf32>
    %42 = vector.shape_cast %39 : vector<1x1xf32> to vector<1x1x1x1xf32>
    tpu.vector_store %arg5[%c0_15, %c0_16, %c0_17, %c0_18], %42 {strides = array<i32>} : memref<1x1x1x1xf32, #tpu.memory_space<vmem>>, vector<1x1x1x1xf32>,
    return
  }
  func.func @transform_0(%arg0: i32, %arg1: i32) -> (i32, i32, i32) {
    %c0_i32 = arith.constant 0 : i32
    %c0_i32_0 = arith.constant 0 : i32
    return %arg0, %c0_i32, %arg1 : i32, i32, i32
  }
  func.func @transform_1(%arg0: i32, %arg1: i32) -> (i32, i32, i32) {
    %c0_i32 = arith.constant 0 : i32
    %c0_i32_0 = arith.constant 0 : i32
    return %arg0, %c0_i32, %arg1 : i32, i32, i32
  }
  func.func @transform_2(%arg0: i32, %arg1: i32) -> (i32, i32, i32, i32) {
    %c0_i32 = arith.constant 0 : i32
    %c0_i32_0 = arith.constant 0 : i32
    %c0_i32_1 = arith.constant 0 : i32
    return %arg0, %arg1, %c0_i32, %c0_i32_0 : i32, i32, i32, i32
  }
  func.func @transform_3(%arg0: i32, %arg1: i32) -> (i32, i32, i32, i32) {
    %c0_i32 = arith.constant 0 : i32
    %c0_i32_0 = arith.constant 0 : i32
    %c0_i32_1 = arith.constant 0 : i32
    return %arg0, %arg1, %c0_i32, %c0_i32_0 : i32, i32, i32, i32
  }
}

</mosaic_0001>

<bundles_post_ra>
// kernel: tpu_custom_call.1
= control target key start
LH: loop header
LB: loop body
LE: loop exit
PB: predicated region body
PF: predicated region fallthrough
CT: control target
= control target key end

     0   :  { %9 = vsyncpa [#allocation3], 0  ;;  %s939_s0 = inlined_call_operand.hbm [shape: f32[2,4,256], index: 0, kind: input, shape index: {}]   ;;  %s940_s1 = inlined_call_operand.hbm [shape: s32[2,1,256], index: 1, kind: input, shape index: {}]   ;;  %s941_s2 = inlined_call_operand.vmem [shape: f32[2,1,1,1], index: 2, kind: output, shape index: {0}]   ;;  %s942_s3 = inlined_call_operand.vmem [shape: f32[2,1,1,1], index: 3, kind: output, shape index: {1}]  }
   0x1   :  { %11 = vsyncpa [#allocation3 + $0x1], 0 }
   0x2   :  { %12 = vsyncpa [#allocation5], 0 }
   0x3   :  { %14 = vsyncpa [#allocation5 + $0x1], 0  ;;  %s792_s12 = smov 0   ;;  %s794_s13 = smov 0  }
   0x4   :  { %s796_s14 = smov 0   ;;  %s798_s15 = smov 0  }
   0x5   :  { %s800_s16 = smov 0   ;;  %s802_s17 = smov 0  }
   0x6 LB: > { %s565_s18 = sadd.s32 4294967295, %s766_s17   ;;  %s32_s19 = sadd.s32 1, %s762_s16  ;;  %s766_s17 = sphi %s802_s17, %s20_s17   ;;  %s762_s16 = sphi %s800_s16, %s951_s16   ;;  %s758_s15 = sphi %s798_s15, %s950_s15   ;;  %s754_s14 = sphi %s796_s14, %s949_s14   ;;  %s750_s13 = sphi %s794_s13, %s948_s13   ;;  %s746_s12 = sphi %s792_s12, %s947_s12  }
   0x7   : > { %p34_p0 = scmp.ge.s32.totalorder %s32_s19, 2  ;;  %s41_s20 = sadd.s32 1, %s754_s14 }
   0x8   : > { %p48_p1 = scmp.ne.s32.totalorder %s754_s14, %s750_s13  ;;  %p49_p2 = scmp.eq.s32.totalorder %s766_s17, 0 }
   0x9   : > { %s953_s19 = smov (%p34_p0, %s32_s19), 0  ;;  %p54_p4 = scmp.ne.s32.totalorder %s750_s13, %s746_s12 }
   0xa   : > { %p828_p3 = por %p49_p2, %p48_p1  ;;  %s36_s22 = ssub.s32 %s762_s16, %s953_s19 }
   0xb   : > { %p55_p5 = scmp.eq.s32.totalorder %s565_s18, 0  ;;  %p39_p6 = scmp.eq.s32.totalorder %s36_s22, 0 }
   0xc   : > { %p598_p8 = scmp.lt.s32.totalorder %s766_s17, 2  ;;  %s844_s25 = sand.u32 1, %s754_s14  }
   0xd   : > { %p835_p7 = por %p55_p5, %p54_p4  ;;  %s581_s26 = sshll.u32 %s762_s16, 7 }
   0xe   : > { %s841_s24 = scalar_select %p39_p6, %s754_s14, %s41_s20  }
   0xf   : > { %s569_s27 = sshll.u32 %s844_s25, 3  ;;  %s174_s30 = scalar_lea.hbm %s939_s0, %s581_s26 }
  0x10   : > { %s166_s4 = scalar_lea.vmem [#allocation2], %s569_s27  ;;  %p853_p9 = pnand %p598_p8, %p828_p3 }
  0x11   : > { %s176_s5 = sshll.u32 %s166_s4, 4  ;;  %p575_p10 = scmp.ge.s32.totalorder %s766_s17, 1  ;;  %s177_s5 = int_to_ptr.vmem [resolvable:$true] %s176_s5 }
  0x12   : > { %p202_p11 = scmp.lt.s32.totalorder %s766_s17, 3  ;;  %s163_s7 = scalar_lea.sflag [#allocation3], %s844_s25 }
  0x13   : > { %p658_p12 = pneg %p853_p9  ;;  %s669_s8 = scalar_lea.vmem %s177_s5, 128 }
  0x14   : > { %p670_p13 = scmp.ne.s32.totalorder %s177_s5, %s669_s8  ;;  %s768_s9 = smov [#allocation2]  }
  0x15   : > { %s674_s10 = sshll.u32 %s768_s9, 4  ;;  %s675_s10 = int_to_ptr.vmem [resolvable:$false] %s674_s10 }
  0x16   : > { %p672_p0 = pnand %p670_p13, %p658_p12  ;;  %s676_s11 = scalar_lea.vmem %s675_s10, 256 }
  0x17   : > { %p677_p2 = scmp.lt.s32.totalorder %s177_s5, %s675_s10  ;;  %p678_p3 = scmp.lt.s32.totalorder %s676_s11, %s669_s8 }
  0x18   : > { %p673_p1 = pneg %p672_p0 }
  0x19   : > { %p679_p4 = por %p678_p3, %p677_p2 }
  0x1b   : > { %p680_p5 = pnand %p679_p4, %p673_p1 }
  0x1d   : > { %683 = shalt.err (!%p680_p5)
}
  0x1e   : > { %594 = dma.hbm_to_vmem [thread:$0]  (!%p853_p9), %s174_s30, 128, %s177_s5, %s163_s7  }
  0x1f   : > { %p871_p6 = pnand %p575_p10, %p202_p11  ;;  %s572_s18 = sshll.u32 %s844_s25, 1 }
  0x20   : > { %s582_s20 = sshll.u32 %s762_s16, 5  ;;  %s187_s27 = scalar_lea.vmem [#allocation4], %s572_s18 }
  0x21   : > { %s195_s26 = scalar_lea.hbm %s940_s1, %s582_s20  ;;  %s197_s28 = sshll.u32 %s187_s27, 4  ;;  %s198_s28 = int_to_ptr.vmem [resolvable:$true] %s197_s28 }
  0x22   : > { %s184_s29 = scalar_lea.sflag [#allocation5], %s844_s25  ;;  %s697_s4 = scalar_lea.vmem %s198_s28, 32 }
  0x23   : > { %p698_p8 = scmp.ne.s32.totalorder %s198_s28, %s697_s4  ;;  %s769_s30 = smov [#allocation4]  }
  0x24   : > { %s702_s5 = sshll.u32 %s769_s30, 4  ;;  %s703_s5 = int_to_ptr.vmem [resolvable:$false] %s702_s5 }
  0x25   : > { %p700_p13 = pnand %p698_p8, %p658_p12  ;;  %s704_s7 = scalar_lea.vmem %s703_s5, 64 }
  0x26   : > { %p705_p10 = scmp.lt.s32.totalorder %s198_s28, %s703_s5  ;;  %p706_p11 = scmp.lt.s32.totalorder %s704_s7, %s697_s4 }
  0x27   : > { %p701_p0 = pneg %p700_p13 }
  0x28   : > { %p707_p1 = por %p706_p11, %p705_p10 }
  0x2a   : > { %p708_p2 = pnand %p707_p1, %p701_p0 }
  0x2c   : > { %711 = shalt.err (!%p708_p2)
}
  0x2d   : > { %597 = dma.hbm_to_vmem [thread:$0]  (!%p853_p9), %s195_s26, 32, %s198_s28, %s184_s29  }
  0x2e   : > { %206 = sbr.rel (%p871_p6) target bundleno = 344 (0x158), region = 28  ;;  %s208_s25 = sand.u32 (!%p871_p6), 1, %s750_s13  }
  0x2f   : > { %s576_s8 = sshll.u32 (!%p871_p6), %s208_s25, 3  ;;  %s209_s9 = scalar_lea.sflag (!%p871_p6), [#allocation3], %s208_s25 }
  0x30   : > { %s212_s10 = scalar_lea.vmem (!%p871_p6), [#allocation2], %s576_s8 }
  0x33   : > { %737 = dma.done.wait (%p835_p7), %s209_s9, 128  }
  0x34   : > { %739 = vsyncadd (%p835_p7), %s209_s9, 4294967168  ;;  %s577_s11 = sshll.u32 %s208_s25, 1  ;;  %s218_s18 = scalar_lea.sflag [#allocation5], %s208_s25 }
  0x35   : > { %s221_s20 = scalar_lea.vmem [#allocation4], %s577_s11 }
  0x36   : > { %741 = dma.done.wait (%p835_p7), %s218_s18, 32  }
  0x37   : > { %743 = vsyncadd (%p835_p7), %s218_s18, 4294967264  ;;  %vm275_vm0 = vcmask 1043456   ;;  %v270_v0 = vld [vmem:[%s212_s10] sm:$0xff]  ;;  %v320_v18 = vlaneseq  ;;  %v271_v22 = vld [vmem:[%s221_s20] sm:$0x3]  ;;  %vm381_vm4 = vcmask 1040384  }
  0x38   : > { %v273_v1 = vcombine.high %v270_v0, %v270_v0  ;;  %v276_v2 = vsel %vm275_vm0, %v270_v0, -inf  ;;  %v770_v56 = vmov 1966171168   ;;  %vm348_vm3 = vcmp.ne.s32.totalorder %v271_v22, 4294967295  ;;  %p258_p7 = scmp.lt.s32.totalorder %s758_s15, 1 }
  0x39   : > { %v277_v3 = vrot.slane %v276_v2, 4  ;;  %v321_v20 = vshrl.u32 %v320_v18, 7  ;;  %v355_v57 = vunpack.c.l.s4 %v770_v56  ;;  %vm395_vm5 = vcmask 0  }
  0x3a   : > { %v283_v4 = vsel %vm275_vm0, %v273_v1, -inf  ;;  %s955_s15 = smov (!%p258_p7, %s758_s15), 1 }
  0x3b   : > { %v278_v5 = vmax.f32 %v276_v2, %v277_v3  ;;  %v284_v6 = vrot.slane %v283_v4, 4  ;;  %v899_v21 = vsub.s32 0, %v321_v20  ;;  %v901_v23 = vsub.s32 1, %v321_v20  ;;  %s263_s12 = scalar_lea.vmem %s941_s2, %s955_s15  ;;  %s269_s27 = scalar_lea.vmem %s942_s3, %s955_s15 }
  0x3d   : > { %v279_v7 = vrot.slane %v278_v5, 2  ;;  %v285_v8 = vmax.f32 %v283_v4, %v284_v6  ;;  %v325_v24 = vrot.slane %v271_v22, %v899_v21  ;;  %v329_v25 = vrot.slane %v271_v22, %v901_v23 }
  0x3f   : > { %v280_v9 = vmax.f32 %v278_v5, %v279_v7  ;;  %v286_v10 = vrot.slane %v285_v8, 2  ;;  %vm330_vm1 = vcmp.eq.s32.totalorder %v321_v20, %v325_v24  ;;  %vm331_vm2 = vcmp.eq.s32.totalorder %v321_v20, %v329_v25 }
  0x40   : > { %v332_v30 = vsel %vm330_vm1, %v270_v0, 0.0  ;;  %v333_v34 = vsel %vm331_vm2, %v273_v1, 0.0  ;;  %v356_v1 = vunpack.c.0.s8 %v355_v57 }
  0x41   : > { %v281_v11 = vrot.slane %v280_v9, 1  ;;  %v287_v12 = vmax.f32 %v285_v8, %v286_v10  ;;  %v334_v35 = vsel %vm275_vm0, %v332_v30, 0.0  ;;  %v341_v38 = vsel %vm275_vm0, %v333_v34, 0.0 }
  0x42   : > { %v335_v41 = vrot.slane %v334_v35, 4  ;;  %v342_v44 = vrot.slane %v341_v38, 4  ;;  %v359_v5 = vsub.s32 %v356_v1, %v321_v20  ;;  %v771_v8 = vmov 0.0  }
  0x43   : > { %v282_v13 = vmax.f32 %v280_v9, %v281_v11  ;;  %v288_v14 = vrot.slane %v287_v12, 1  ;;  %v578_v9 = vsel %vm348_vm3, 1.0, %v771_v8 }
  0x44   : > { %v336_v47 = vadd.f32 %v335_v41, %v334_v35  ;;  %v343_v49 = vadd.f32 %v342_v44, %v341_v38  ;;  %v403_v11 = vrot.slane %v578_v9, %v899_v21 }
  0x45   : > { %v289_v15 = vmax.f32 %v287_v12, %v288_v14  ;;  %v407_v12 = vrot.slane %v578_v9, %v901_v23 }
  0x46   : > { %v337_v50 = vrot.slane %v336_v47, 2  ;;  %v344_v51 = vrot.slane %v343_v49, 2  ;;  %v410_v18 = vsel %vm381_vm4, %v403_v11, 0.0 }
  0x47   : > { %v292_v16 = vcombine.low %v282_v13, %v289_v15 }
  0x48   : > { %v338_v52 = vadd.f32 %v337_v50, %v336_v47  ;;  %v345_v53 = vadd.f32 %v344_v51, %v343_v49 }
  0x49   : > { %v294_v17 = vsub.f32 %v270_v0, %v292_v16 }
  0x4a   : > { %v339_v54 = vrot.slane %v338_v52, 1  ;;  %v346_v55 = vrot.slane %v345_v53, 1 }
  0x4b   : > { %v295_v19 = vmul.f32 1.442695, %v294_v17 }
  0x4c   : > { %v340_v60 = vadd.f32 %v339_v54, %v338_v52  ;;  %v347_v0 = vadd.f32 %v346_v55, %v345_v53 }
  0x4d   : > { %650 = vpow2.f32 %v295_v19  ;;  %v411_v19 = vsel %vm381_vm4, %v407_v12, 0.0 }
  0x4e   : > { %v412_v22 = vadd.f32 %v411_v19, %v410_v18 }
  0x5a   : > { %v651_v26 = vpop.eup %650 }
  0x5b   : > { %v298_v27 = vcombine.high %v651_v26, %v651_v26  ;;  %v300_v28 = vsel %vm275_vm0, %v651_v26, 0.0 }
  0x5c   : > { %v301_v29 = vrot.slane %v300_v28, 4 }
  0x5d   : > { %v307_v31 = vsel %vm275_vm0, %v298_v27, 0.0 }
  0x5e   : > { %v302_v32 = vadd.f32 %v301_v29, %v300_v28  ;;  %v308_v33 = vrot.slane %v307_v31, 4 }
  0x60   : > { %v303_v36 = vrot.slane %v302_v32, 2  ;;  %v309_v37 = vadd.f32 %v308_v33, %v307_v31 }
  0x62   : > { %v304_v39 = vadd.f32 %v303_v36, %v302_v32  ;;  %v310_v40 = vrot.slane %v309_v37, 2 }
  0x64   : > { %v305_v42 = vrot.slane %v304_v39, 1  ;;  %v311_v43 = vadd.f32 %v310_v40, %v309_v37 }
  0x66   : > { %v306_v45 = vadd.f32 %v305_v42, %v304_v39  ;;  %v312_v46 = vrot.slane %v311_v43, 1 }
  0x68   : > { %v313_v48 = vadd.f32 %v312_v46, %v311_v43  ;;  %652 = vlog2.f32 %v306_v45 }
  0x6a   : > { %654 = vlog2.f32 %v313_v48 }
  0x75   : > { %v653_v58 = vpop.eup %652 }
  0x76   : > { %v315_v59 = vmul.f32 0.6931472, %v653_v58 }
  0x77   : > { %v655_v61 = vpop.eup %654 }
  0x78   : > { %v317_v62 = vmul.f32 0.6931472, %v655_v61  ;;  %v318_v63 = vadd.f32 %v315_v59, %v282_v13 }
  0x7a   : > { %v319_v2 = vadd.f32 %v317_v62, %v289_v15  ;;  %v349_v3 = vsub.f32 %v318_v63, %v340_v60 }
  0x7c   : > { %v350_v4 = vsub.f32 %v319_v2, %v347_v0 }
  0x7e   : > { %v353_v6 = vcombine.low %v349_v3, %v350_v4 }
  0x80   : > { %v360_v7 = vrot.slane %v353_v6, %v359_v5 }
  0x82   : > { %v367_v10 = vrot.slane %v360_v7, %v359_v5 }
  0x84   : > { %v369_v14 = vsel %vm348_vm3, %v367_v10, 0.0 }
  0x85   : > { %v374_v13 = vrot.slane %v369_v14, %v899_v21  ;;  %v378_v16 = vrot.slane %v369_v14, %v901_v23 }
  0x87   : > { %v382_v15 = vsel %vm381_vm4, %v374_v13, 0.0  ;;  %v383_v17 = vsel %vm381_vm4, %v378_v16, 0.0 }
  0x88   : > { %v384_v20 = vadd.f32 %v383_v17, %v382_v15 }
  0x8a   : > { %385 = vadd.xlane.f32.xlu0 %v384_v20 }
  0x8e   : > { %413 = vadd.xlane.f32.xlu0 %v412_v22 }
 0x113   : > { %v386_v24 = vpop.xlane.xlu0 %385 }
 0x114   : > { %v387_v25 = vrot.slane %v386_v24, 4 }
 0x116   : > { %v388_v26 = vadd.f32 %v387_v25, %v386_v24 }
 0x117   : > { %v414_v27 = vpop.xlane.xlu0 %413 }
 0x118   : > { %v389_v28 = vrot.slane %v388_v26, 2  ;;  %v415_v29 = vrot.slane %v414_v27, 4 }
 0x11a   : > { %v416_v30 = vadd.f32 %v415_v29, %v414_v27  ;;  %v390_v21 = vadd.f32 %v389_v28, %v388_v26 }
 0x11c   : > { %v417_v31 = vrot.slane %v416_v30, 2  ;;  %v391_v23 = vrot.slane %v390_v21, 1 }
 0x11e   : > { %v418_v32 = vadd.f32 %v417_v31, %v416_v30  ;;  %v392_v33 = vadd.f32 %v391_v23, %v390_v21 }
 0x120   : > { %583 = vpush %v392_v33  ;;  %v419_v34 = vrot.slane %v418_v32, 1 }
 0x122   : > { %v420_v35 = vadd.f32 %v419_v34, %v418_v32 }
 0x124   : > { %585 = vpush %v420_v35 }
 0x151   : > { %s584_s21 = spop %583 }
 0x152   : > { %v394_v36 = vstv %s584_s21 }
 0x153   : > { %396 = vst.msk [vmem:[%s263_s12] sm:$0x1] %vm395_vm5, %v394_v36 }
 0x155   : > { %s586_s28 = spop %585 }
 0x156   : > { %v422_v37 = vstv %s586_s28 }
 0x157   : > { %423 = vst.msk [vmem:[%s269_s27] sm:$0x1] %vm395_vm5, %v422_v37 }
 0x158 PF: > { %s20_s17 = sadd.s32 1, %s766_s17   ;;  %s947_s12 = smov %s750_s13 }
 0x159   : > { %p17_p9 = scmp.ge.s32.totalorder %s20_s17, 4   ;;  %s948_s13 = smov %s754_s14 }
 0x15a   : > { %s949_s14 = smov %s841_s24  ;;  %s950_s15 = smov %s762_s16 }
 0x15b   : > { %s951_s16 = smov %s953_s19  ;;  %19 = sbr.rel (!%p17_p9) target bundleno = 6 (0x6), region = 93 }
 0x160   :  { %465 = vsyncpa [#allocation3], 1 }
 0x161   :  { %467 = vsyncpa [#allocation3 + $0x1], 1 }
 0x162   :  { %468 = vsyncpa [#allocation5], 1 }
 0x163   :  { %470 = vsyncpa [#allocation5 + $0x1], 1 }

</bundles_post_ra>
